<compile_context>
chip_gen: v7x
topology: tpu7x:2x2x1
jax: 0.10.0
libtpu: 0.0.40
codegen_flags: <defaults>
</compile_context>

<pallas_src>
import functools

import jax
import jax.numpy as jnp
from jax.experimental import pallas as pl
from jax.experimental.pallas import tpu as pltpu


# ------------------------------------------------------------------
# Pallas kernel: transposed, lane-dense fused GEMM + bias + activation
#   O[C_out, M] = act(W[C_out, K] @ A[K, M] + b[C_out, 1])
# ------------------------------------------------------------------
def _gemm_bias_act_kernel(act, w_ref, a_ref, b_ref, o_ref):
    y = jnp.dot(w_ref[...], a_ref[...], preferred_element_type=jnp.float32)
    y = y + b_ref[...]                       # f32 bias, broadcast over lanes
    if act == "relu":
        y = jnp.maximum(y, 0.0)
    elif act == "tanh":
        y = jnp.tanh(y)
    o_ref[...] = y.astype(o_ref.dtype)


def gemm_bias_act(w_mat, a, bias, act, out_dtype):
    """w_mat: [C_out, K], a: [K, M], bias: [C_out] -> [C_out, M].

    Single full-array VMEM block per operand (all shapes here are tiny),
    bf16 MXU inputs, f32 accumulation, bias + activation fused in the
    epilogue, no grid (no degenerate pipeline, no double buffering).
    """
    c_out, _ = w_mat.shape
    m = a.shape[1]
    vmem = pl.BlockSpec(memory_space=pltpu.MemorySpace.VMEM)
    return pl.pallas_call(
        functools.partial(_gemm_bias_act_kernel, act),
        out_shape=jax.ShapeDtypeStruct((c_out, m), out_dtype),
        in_specs=[vmem, vmem, vmem],
        out_specs=vmem,
    )(w_mat.astype(jnp.bfloat16),
      a.astype(jnp.bfloat16),
      bias.reshape(c_out, 1).astype(jnp.float32))


# ------------------------------------------------------------------
# Layout glue (pure gathers / pads / reshapes, no FLOPs) — XLA wrapper side
# ------------------------------------------------------------------
def im2col_T(x, kh, kw, stride, pad):
    """x: [N,H,W,C] -> A: [kh*kw*C, N*oh*ow]  (K on sublanes, M on lanes)."""
    n, h, w, c = x.shape
    if pad:
        x = jnp.pad(x, ((0, 0), (pad, pad), (pad, pad), (0, 0)))
    hp, wp = h + 2 * pad, w + 2 * pad
    oh = (hp - kh) // stride + 1
    ow = (wp - kw) // stride + 1
    taps = []
    for i in range(kh):
        for j in range(kw):
            taps.append(
                x[:, i:i + stride * oh:stride, j:j + stride * ow:stride, :])
    col = jnp.stack(taps, axis=0)            # [kh*kw, N, oh, ow, C]
    col = jnp.moveaxis(col, -1, 1)           # [kh*kw, C, N, oh, ow]
    return col.reshape(kh * kw * c, n * oh * ow), oh, ow


def maxpool2d(x, k, s):
    """MaxPool2d(k, stride=s) on NHWC via elementwise max over shifted views."""
    n, h, w, c = x.shape
    oh = (h - k) // s + 1
    ow = (w - k) // s + 1
    out = None
    for di in range(k):
        for dj in range(k):
            v = x[:, di:di + s * (oh - 1) + 1:s, dj:dj + s * (ow - 1) + 1:s, :]
            out = v if out is None else jnp.maximum(out, v)
    return out


def dilate(x, stride):
    """Interior (zero-interleave) padding of H and W via lax.pad (no scatter)."""
    if stride == 1:
        return x
    zero = jnp.array(0, x.dtype)
    return jax.lax.pad(
        x, zero,
        ((0, 0, 0), (0, 0, stride - 1), (0, 0, stride - 1), (0, 0, 0)))


def conv2d_gemm(x, w, b, stride, pad, act, out_dtype):
    """PyTorch Conv2d (+bias+act) as one lane-dense Pallas GEMM.
    x: NHWC; w: PyTorch layout (C_out, C_in, kh, kw)."""
    c_out, c_in, kh, kw = w.shape
    a, oh, ow = im2col_T(x, kh, kw, stride, pad)             # [K, M]
    w_mat = jnp.transpose(w, (0, 2, 3, 1)).reshape(c_out, kh * kw * c_in)
    o = gemm_bias_act(w_mat, a, b, act, out_dtype)           # [C_out, M]
    n = x.shape[0]
    o = o.reshape(c_out, n, oh, ow)
    return jnp.transpose(o, (1, 2, 3, 0))                    # NHWC


def conv_transpose2d_gemm(x, w, b, stride, pad, act, out_dtype):
    """PyTorch ConvTranspose2d (+bias+act): dilate input by `stride`, conv with
    the spatially-flipped, in/out-swapped kernel, padding kh-1-pad, stride 1 —
    a single fused lane-dense GEMM.  w layout: (C_in, C_out, kh, kw)."""
    _, _, kh, kw = w.shape
    w_eq = jnp.transpose(jnp.flip(w, axis=(2, 3)), (1, 0, 2, 3))
    xd = dilate(x, stride)
    return conv2d_gemm(xd, w_eq, b, 1, kh - 1 - pad, act, out_dtype)


# ------------------------------------------------------------------
# Parameters (deterministic, synthetic) — same layer shapes as the PyTorch module
# ------------------------------------------------------------------
def init_params(key):
    ks = jax.random.split(key, 10)

    def w(k, shape, scale=0.1):
        return jax.random.normal(k, shape, jnp.float32) * scale

    return {
        # encoder: Conv2d weight layout (C_out, C_in, kh, kw)
        "enc1_w": w(ks[0], (16, 1, 3, 3)),  "enc1_b": w(ks[1], (16,), 0.05),
        "enc2_w": w(ks[2], (8, 16, 3, 3)),  "enc2_b": w(ks[3], (8,), 0.05),
        # decoder: ConvTranspose2d weight layout (C_in, C_out, kh, kw)
        "dec1_w": w(ks[4], (8, 16, 3, 3)),  "dec1_b": w(ks[5], (16,), 0.05),
        "dec2_w": w(ks[6], (16, 8, 5, 5)),  "dec2_b": w(ks[7], (8,), 0.05),
        "dec3_w": w(ks[8], (8, 1, 2, 2)),   "dec3_b": w(ks[9], (1,), 0.05),
    }


# ------------------------------------------------------------------
# Forward pass (matches autoencoder.forward): 5 fused Pallas GEMMs
# ------------------------------------------------------------------
def forward(params, x_nchw):
    x = jnp.transpose(x_nchw, (0, 2, 3, 1)).astype(jnp.bfloat16)  # NCHW->NHWC

    # encoder
    # Conv2d(1,16,3,s=3,p=1) + ReLU                          : 28 -> 10
    x = conv2d_gemm(x, params["enc1_w"], params["enc1_b"], 3, 1, "relu",
                    jnp.bfloat16)
    # MaxPool2d(2, stride=2)                                 : 10 -> 5
    x = maxpool2d(x, 2, 2)
    # Conv2d(16,8,3,s=2,p=1) + ReLU                          : 5 -> 3
    x = conv2d_gemm(x, params["enc2_w"], params["enc2_b"], 2, 1, "relu",
                    jnp.bfloat16)
    # MaxPool2d(2, stride=1)                                 : 3 -> 2
    x = maxpool2d(x, 2, 1)

    # decoder
    # ConvTranspose2d(8,16,3,s=2) + ReLU                     : 2 -> 5
    x = conv_transpose2d_gemm(x, params["dec1_w"], params["dec1_b"], 2, 0,
                              "relu", jnp.bfloat16)
    # ConvTranspose2d(16,8,5,s=3,p=1) + ReLU                 : 5 -> 15
    x = conv_transpose2d_gemm(x, params["dec2_w"], params["dec2_b"], 3, 1,
                              "relu", jnp.bfloat16)
    # ConvTranspose2d(8,1,2,s=2,p=1) + Tanh                  : 15 -> 28
    x = conv_transpose2d_gemm(x, params["dec3_w"], params["dec3_b"], 2, 1,
                              "tanh", jnp.float32)

    return jnp.transpose(x, (0, 3, 1, 2))                        # NHWC->NCHW


# ------------------------------------------------------------------
# Pure-JAX (f32, XLA conv) reference for correctness checking
# ------------------------------------------------------------------
def ref_forward(params, x):
    dn = ("NCHW", "OIHW", "NCHW")

    def conv(y, w, b, s, p):
        y = jax.lax.conv_general_dilated(
            y, w, (s, s), ((p, p), (p, p)), dimension_numbers=dn)
        return jnp.maximum(y + b.reshape(1, -1, 1, 1), 0.0)

    def convT(y, w, b, s, p, act):
        kh = w.shape[2]
        w_eq = jnp.transpose(jnp.flip(w, axis=(2, 3)), (1, 0, 2, 3))
        y = jax.lax.conv_general_dilated(
            y, w_eq, (1, 1), ((kh - 1 - p,) * 2,) * 2,
            lhs_dilation=(s, s), dimension_numbers=dn)
        y = y + b.reshape(1, -1, 1, 1)
        return jnp.maximum(y, 0.0) if act == "relu" else jnp.tanh(y)

    def pool(y, k, s):
        return jax.lax.reduce_window(
            y, -jnp.inf, jax.lax.max, (1, 1, k, k), (1, 1, s, s), "VALID")

    y = conv(x, params["enc1_w"], params["enc1_b"], 3, 1)
    y = pool(y, 2, 2)
    y = conv(y, params["enc2_w"], params["enc2_b"], 2, 1)
    y = pool(y, 2, 1)
    y = convT(y, params["dec1_w"], params["dec1_b"], 2, 0, "relu")
    y = convT(y, params["dec2_w"], params["dec2_b"], 3, 1, "relu")
    y = convT(y, params["dec3_w"], params["dec3_b"], 2, 1, "tanh")
    return y


# ------------------------------------------------------------------
if __name__ == "__main__":
    key = jax.random.PRNGKey(0)
    kp, kx = jax.random.split(key)

    params = init_params(kp)
    x = jax.random.uniform(kx, (2, 1, 28, 28), jnp.float32) * 2.0 - 1.0

    out = jax.jit(forward)(params, x)
    jax.block_until_ready(out)

    assert out.shape == (2, 1, 28, 28)
    assert bool(jnp.all(jnp.isfinite(out)))
    assert bool(jnp.all(jnp.abs(out) <= 1.0 + 1e-6))     # tanh output range

    ref = jax.jit(ref_forward)(params, x)
    err = float(jnp.max(jnp.abs(out - ref)))
    assert err < 5e-2, f"max abs error vs f32 reference too large: {err}"

    print("KERNEL_OK")
</pallas_src>

<mosaic_0001>
module attributes {stable_mosaic.version = 11 : i64} {
  func.func @_gemm_bias_act_kernel(%arg0: memref<16x9xbf16, #tpu.memory_space<vmem>>, %arg1: memref<9x200xbf16, #tpu.memory_space<vmem>>, %arg2: memref<16x1xf32, #tpu.memory_space<vmem>>, %arg3: memref<16x200xbf16, #tpu.memory_space<vmem>>) attributes {dimension_semantics = [], scalar_prefetch = 0 : i64, scratch_operands = 0 : i64, tpu.core_type = #tpu.core_type<tc>} {
    %c0 = arith.constant 0 : index
    %c0_0 = arith.constant 0 : index
    %0 = vector.load %arg0[%c0, %c0_0] : memref<16x9xbf16, #tpu.memory_space<vmem>>, vector<16x9xbf16>
    %c0_1 = arith.constant 0 : index
    %c0_2 = arith.constant 0 : index
    %1 = vector.load %arg1[%c0_1, %c0_2] : memref<9x200xbf16, #tpu.memory_space<vmem>>, vector<9x200xbf16>
    %cst = arith.constant dense<0.000000e+00> : vector<16x200xf32>
    %2 = tpu.matmul %0, %1, %cst {dimension_numbers = #tpu.dot_dimension_numbers<[1], [0], [0], [1], [0, 0, 1, 1], [], []>} : vector<16x9xbf16>, vector<9x200xbf16>, vector<16x200xf32> -> vector<16x200xf32>
    %c0_3 = arith.constant 0 : index
    %c0_4 = arith.constant 0 : index
    %3 = vector.load %arg2[%c0_3, %c0_4] : memref<16x1xf32, #tpu.memory_space<vmem>>, vector<16x1xf32>
    %4 = vector.broadcast %3 : vector<16x1xf32> to vector<16x200xf32>
    %5 = arith.addf %2, %4 : vector<16x200xf32>
    %cst_5 = arith.constant 0.000000e+00 : f32
    %6 = vector.broadcast %cst_5 : f32 to vector<16x200xf32>
    %7 = arith.maximumf %5, %6 : vector<16x200xf32>
    %8 = arith.truncf %7 : vector<16x200xf32> to vector<16x200xbf16>
    %c0_6 = arith.constant 0 : index
    %c0_7 = arith.constant 0 : index
    %9 = vector.load %arg3[%c0_6, %c0_7] : memref<16x200xbf16, #tpu.memory_space<vmem>>, vector<16x200xbf16>
    tpu.vector_store %arg3[%c0_6, %c0_7], %8 {strides = array<i32>} : memref<16x200xbf16, #tpu.memory_space<vmem>>, vector<16x200xbf16>,
    return
  }
}

module attributes {stable_mosaic.version = 11 : i64} {
  func.func @_gemm_bias_act_kernel(%arg0: memref<8x144xbf16, #tpu.memory_space<vmem>>, %arg1: memref<144x18xbf16, #tpu.memory_space<vmem>>, %arg2: memref<8x1xf32, #tpu.memory_space<vmem>>, %arg3: memref<8x18xbf16, #tpu.memory_space<vmem>>) attributes {dimension_semantics = [], scalar_prefetch = 0 : i64, scratch_operands = 0 : i64, tpu.core_type = #tpu.core_type<tc>} {
    %c0 = arith.constant 0 : index
    %c0_0 = arith.constant 0 : index
    %0 = vector.load %arg0[%c0, %c0_0] : memref<8x144xbf16, #tpu.memory_space<vmem>>, vector<8x144xbf16>
    %c0_1 = arith.constant 0 : index
    %c0_2 = arith.constant 0 : index
    %1 = vector.load %arg1[%c0_1, %c0_2] : memref<144x18xbf16, #tpu.memory_space<vmem>>, vector<144x18xbf16>
    %cst = arith.constant dense<0.000000e+00> : vector<8x18xf32>
    %2 = tpu.matmul %0, %1, %cst {dimension_numbers = #tpu.dot_dimension_numbers<[1], [0], [0], [1], [0, 0, 1, 1], [], []>} : vector<8x144xbf16>, vector<144x18xbf16>, vector<8x18xf32> -> vector<8x18xf32>
    %c0_3 = arith.constant 0 : index
    %c0_4 = arith.constant 0 : index
    %3 = vector.load %arg2[%c0_3, %c0_4] : memref<8x1xf32, #tpu.memory_space<vmem>>, vector<8x1xf32>
    %4 = vector.broadcast %3 : vector<8x1xf32> to vector<8x18xf32>
    %5 = arith.addf %2, %4 : vector<8x18xf32>
    %cst_5 = arith.constant 0.000000e+00 : f32
    %6 = vector.broadcast %cst_5 : f32 to vector<8x18xf32>
    %7 = arith.maximumf %5, %6 : vector<8x18xf32>
    %8 = arith.truncf %7 : vector<8x18xf32> to vector<8x18xbf16>
    %c0_6 = arith.constant 0 : index
    %c0_7 = arith.constant 0 : index
    %9 = vector.load %arg3[%c0_6, %c0_7] : memref<8x18xbf16, #tpu.memory_space<vmem>>, vector<8x18xbf16>
    tpu.vector_store %arg3[%c0_6, %c0_7], %8 {strides = array<i32>} : memref<8x18xbf16, #tpu.memory_space<vmem>>, vector<8x18xbf16>,
    return
  }
}

module attributes {stable_mosaic.version = 11 : i64} {
  func.func @_gemm_bias_act_kernel(%arg0: memref<16x72xbf16, #tpu.memory_space<vmem>>, %arg1: memref<72x50xbf16, #tpu.memory_space<vmem>>, %arg2: memref<16x1xf32, #tpu.memory_space<vmem>>, %arg3: memref<16x50xbf16, #tpu.memory_space<vmem>>) attributes {dimension_semantics = [], scalar_prefetch = 0 : i64, scratch_operands = 0 : i64, tpu.core_type = #tpu.core_type<tc>} {
    %c0 = arith.constant 0 : index
    %c0_0 = arith.constant 0 : index
    %0 = vector.load %arg0[%c0, %c0_0] : memref<16x72xbf16, #tpu.memory_space<vmem>>, vector<16x72xbf16>
    %c0_1 = arith.constant 0 : index
    %c0_2 = arith.constant 0 : index
    %1 = vector.load %arg1[%c0_1, %c0_2] : memref<72x50xbf16, #tpu.memory_space<vmem>>, vector<72x50xbf16>
    %cst = arith.constant dense<0.000000e+00> : vector<16x50xf32>
    %2 = tpu.matmul %0, %1, %cst {dimension_numbers = #tpu.dot_dimension_numbers<[1], [0], [0], [1], [0, 0, 1, 1], [], []>} : vector<16x72xbf16>, vector<72x50xbf16>, vector<16x50xf32> -> vector<16x50xf32>
    %c0_3 = arith.constant 0 : index
    %c0_4 = arith.constant 0 : index
    %3 = vector.load %arg2[%c0_3, %c0_4] : memref<16x1xf32, #tpu.memory_space<vmem>>, vector<16x1xf32>
    %4 = vector.broadcast %3 : vector<16x1xf32> to vector<16x50xf32>
    %5 = arith.addf %2, %4 : vector<16x50xf32>
    %cst_5 = arith.constant 0.000000e+00 : f32
    %6 = vector.broadcast %cst_5 : f32 to vector<16x50xf32>
    %7 = arith.maximumf %5, %6 : vector<16x50xf32>
    %8 = arith.truncf %7 : vector<16x50xf32> to vector<16x50xbf16>
    %c0_6 = arith.constant 0 : index
    %c0_7 = arith.constant 0 : index
    %9 = vector.load %arg3[%c0_6, %c0_7] : memref<16x50xbf16, #tpu.memory_space<vmem>>, vector<16x50xbf16>
    tpu.vector_store %arg3[%c0_6, %c0_7], %8 {strides = array<i32>} : memref<16x50xbf16, #tpu.memory_space<vmem>>, vector<16x50xbf16>,
    return
  }
}

module attributes {stable_mosaic.version = 11 : i64} {
  func.func @_gemm_bias_act_kernel(%arg0: memref<8x400xbf16, #tpu.memory_space<vmem>>, %arg1: memref<400x450xbf16, #tpu.memory_space<vmem>>, %arg2: memref<8x1xf32, #tpu.memory_space<vmem>>, %arg3: memref<8x450xbf16, #tpu.memory_space<vmem>>) attributes {dimension_semantics = [], scalar_prefetch = 0 : i64, scratch_operands = 0 : i64, tpu.core_type = #tpu.core_type<tc>} {
    %c0 = arith.constant 0 : index
    %c0_0 = arith.constant 0 : index
    %0 = vector.load %arg0[%c0, %c0_0] : memref<8x400xbf16, #tpu.memory_space<vmem>>, vector<8x400xbf16>
    %c0_1 = arith.constant 0 : index
    %c0_2 = arith.constant 0 : index
    %1 = vector.load %arg1[%c0_1, %c0_2] : memref<400x450xbf16, #tpu.memory_space<vmem>>, vector<400x450xbf16>
    %cst = arith.constant dense<0.000000e+00> : vector<8x450xf32>
    %2 = tpu.matmul %0, %1, %cst {dimension_numbers = #tpu.dot_dimension_numbers<[1], [0], [0], [1], [0, 0, 1, 1], [], []>} : vector<8x400xbf16>, vector<400x450xbf16>, vector<8x450xf32> -> vector<8x450xf32>
    %c0_3 = arith.constant 0 : index
    %c0_4 = arith.constant 0 : index
    %3 = vector.load %arg2[%c0_3, %c0_4] : memref<8x1xf32, #tpu.memory_space<vmem>>, vector<8x1xf32>
    %4 = vector.broadcast %3 : vector<8x1xf32> to vector<8x450xf32>
    %5 = arith.addf %2, %4 : vector<8x450xf32>
    %cst_5 = arith.constant 0.000000e+00 : f32
    %6 = vector.broadcast %cst_5 : f32 to vector<8x450xf32>
    %7 = arith.maximumf %5, %6 : vector<8x450xf32>
    %8 = arith.truncf %7 : vector<8x450xf32> to vector<8x450xbf16>
    %c0_6 = arith.constant 0 : index
    %c0_7 = arith.constant 0 : index
    %9 = vector.load %arg3[%c0_6, %c0_7] : memref<8x450xbf16, #tpu.memory_space<vmem>>, vector<8x450xbf16>
    tpu.vector_store %arg3[%c0_6, %c0_7], %8 {strides = array<i32>} : memref<8x450xbf16, #tpu.memory_space<vmem>>, vector<8x450xbf16>,
    return
  }
}

module attributes {stable_mosaic.version = 11 : i64} {
  func.func @_gemm_bias_act_kernel(%arg0: memref<1x32xbf16, #tpu.memory_space<vmem>>, %arg1: memref<32x1568xbf16, #tpu.memory_space<vmem>>, %arg2: memref<1x1xf32, #tpu.memory_space<vmem>>, %arg3: memref<1x1568xf32, #tpu.memory_space<vmem>>) attributes {dimension_semantics = [], scalar_prefetch = 0 : i64, scratch_operands = 0 : i64, tpu.core_type = #tpu.core_type<tc>} {
    %c0 = arith.constant 0 : index
    %c0_0 = arith.constant 0 : index
    %0 = vector.load %arg0[%c0, %c0_0] : memref<1x32xbf16, #tpu.memory_space<vmem>>, vector<1x32xbf16>
    %c0_1 = arith.constant 0 : index
    %c0_2 = arith.constant 0 : index
    %1 = vector.load %arg1[%c0_1, %c0_2] : memref<32x1568xbf16, #tpu.memory_space<vmem>>, vector<32x1568xbf16>
    %cst = arith.constant dense<0.000000e+00> : vector<1x1568xf32>
    %2 = tpu.matmul %0, %1, %cst {dimension_numbers = #tpu.dot_dimension_numbers<[1], [0], [0], [1], [0, 0, 1, 1], [], []>} : vector<1x32xbf16>, vector<32x1568xbf16>, vector<1x1568xf32> -> vector<1x1568xf32>
    %c0_3 = arith.constant 0 : index
    %c0_4 = arith.constant 0 : index
    %3 = vector.load %arg2[%c0_3, %c0_4] : memref<1x1xf32, #tpu.memory_space<vmem>>, vector<1x1xf32>
    %4 = vector.broadcast %3 : vector<1x1xf32> to vector<1x1568xf32>
    %5 = arith.addf %2, %4 : vector<1x1568xf32>
    %6 = math.tanh %5 : vector<1x1568xf32>
    %c0_5 = arith.constant 0 : index
    %c0_6 = arith.constant 0 : index
    %7 = vector.load %arg3[%c0_5, %c0_6] : memref<1x1568xf32, #tpu.memory_space<vmem>>, vector<1x1568xf32>
    tpu.vector_store %arg3[%c0_5, %c0_6], %6 {strides = array<i32>} : memref<1x1568xf32, #tpu.memory_space<vmem>>, vector<1x1568xf32>,
    return
  }
}

</mosaic_0001>

<bundles_post_ra>
// kernel: forward.5
= control target key start
LH: loop header
LB: loop body
LE: loop exit
PB: predicated region body
PF: predicated region fallthrough
CT: control target
= control target key end

     0   :  { %vm48_vm0 = vcmask 1043456   ;;  %vm49_vm1 = vcmask 1044480   ;;  %v140_v1 = vmov 65535   ;;  %v141_v5 = vmov 0   ;;  %s185_s1 = inlined_call_operand.vmem [shape: bf16[9,200], index: 1, kind: input, shape index: {}]   ;;  %s186_s2 = inlined_call_operand.vmem [shape: f32[16,1], index: 2, kind: input, shape index: {}]   ;;  %s187_s0 = inlined_call_operand.vmem [shape: bf16[16,9], index: 0, kind: input, shape index: {}]   ;;  %s188_s3 = inlined_call_operand.vmem [shape: bf16[16,200], index: 3, kind: output, shape index: {}]  }
   0x1   :  { %v136_v0 = vld [vmem:[%s185_s1 + $0x4] ss:$8 sps:$4 sm:$0x1f]   ;;  %v50_v2 = vsel %vm48_vm0, 4294967295, %v140_v1  ;;  %90 = vmatprep.mubr.bf16.mxu0 %v141_v5  ;;  %135 = vset.pattern.permute.xlu0 %v141_v5  ;;  %vm44_vm2 = vcmask 72704   ;;  %vm117_vm3 = vcmask 588804  }
   0x2   :  { %v138_v3 = vld [vmem:[%s185_s1] ss:$8 sps:$4 sm:$0x1f]   ;;  %v51_v4 = vsel %vm49_vm1, %v50_v2, 0  ;;  %vm118_vm4 = vmor %vm117_vm3, %vm48_vm0 }
   0x3   :  { %v56_v6 = vand.u32 %v136_v0, %v51_v4  ;;  %v53_v7 = vand.u32 %v138_v3, %v51_v4  ;;  %v19_v8 = vld [vmem:[%s186_s2] sm:$0xff]  ;;  %v20_v10 = vld [vmem:[%s186_s2 + $0x8] sm:$0xff] }
   0x4   :  { %23 = vperm.xlu0 %135, %v19_v8   ;;  %v139_v9 = vld [vmem:[%s187_s0] sm:$0xff]  }
   0x5   :  { %58 = vmatprep.subr.bf16.mxu0 %v56_v6 }
   0x6   :  { %59 = vmatpush1.bf16.msra.mxu0 %v53_v7 }
   0x8   :  { %28 = vperm.xlu0 %135, %v20_v10  }
   0x9   :  { %128 = vmatmul.mubr.msk.bf16.vlgmr.msra.gmra.mrb[0].mxu0 %vm44_vm2, %v139_v9 }
  0x83   :  { %v24_v11 = vpop.permute.xlu0 %23 }
  0x87   :  { %v29_v15 = vpop.permute.xlu0 %28 }
  0xdc   :  { %v92_v12 = vpop.f32.mrb[0].mxu0 }
  0xdd   :  { %v93_v13 = vadd.f32 %v92_v12, %v24_v11  ;;  %v94_v14 = vpop.f32.mrb[1].mxu0 }
  0xde   :  { %v95_v16 = vadd.f32 %v94_v14, %v24_v11  ;;  %v96_v17 = vpop.f32.mrb[2].mxu0 }
  0xdf   :  { %v101_v18 = vmax.f32 %v93_v13, 0.0  ;;  %v97_v19 = vadd.f32 %v96_v17, %v29_v15  ;;  %v98_v20 = vpop.f32.mrb[3].mxu0 }
  0xe0   :  { %v102_v21 = vmax.f32 %v95_v16, 0.0  ;;  %v99_v22 = vadd.f32 %v98_v20, %v29_v15 }
  0xe1   :  { %v103_v23 = vmax.f32 %v97_v19, 0.0 }
  0xe2   :  { %v131_v24 = vpack.c.bf16 %v102_v21, %v101_v18  ;;  %v104_v25 = vmax.f32 %v99_v22, 0.0 }
  0xe4   :  { %119 = vst.msk [vmem:[%s188_s3] sm:$0xff] %vm118_vm4, %v131_v24  ;;  %v132_v26 = vpack.c.bf16 %v104_v25, %v103_v23 }
  0xe6   :  { %120 = vst.msk [vmem:[%s188_s3 + $0x8] sm:$0xff] %vm118_vm4, %v132_v26 }

// kernel: forward.6
= control target key start
LH: loop header
LB: loop body
LE: loop exit
PB: predicated region body
PF: predicated region fallthrough
CT: control target
= control target key end

     0   :  { %v177_v0 = vmov 0   ;;  %vm100_vm0 = vcmask 130048   ;;  %vm146_vm1 = vcmask 142336   ;;  %s234_s1 = inlined_call_operand.vmem [shape: bf16[144,18], index: 1, kind: input, shape index: {}]   ;;  %s235_s0 = inlined_call_operand.vmem [shape: bf16[8,144], index: 0, kind: input, shape index: {}]   ;;  %s236_s2 = inlined_call_operand.vmem [shape: f32[8,1], index: 2, kind: input, shape index: {}]   ;;  %s237_s3 = inlined_call_operand.vmem [shape: bf16[8,18], index: 3, kind: output, shape index: {}]  }
   0x1   :  { %104 = vmatprep.subr.bf16.mxu0 %v177_v0  ;;  %v166_v1 = vld [vmem:[%s234_s1] sm:$0xff]   ;;  %165 = vset.pattern.permute.xlu0 %v177_v0  ;;  %v167_v2 = vld [vmem:[%s234_s1 + $0x8] sm:$0xff]   ;;  %v168_v3 = vld [vmem:[%s234_s1 + $0x10] sm:$0xff]  }
   0x2   :  { %105 = vmatpush1.bf16.msra.mxu0 %v166_v1  ;;  %v15_v4 = vld [vmem:[%s235_s0] sm:$0xff]  ;;  %v169_v6 = vld [vmem:[%s234_s1 + $0x18] sm:$0xff]   ;;  %v171_v9 = vld [vmem:[%s234_s1 + $0x28] sm:$0xff]  }
   0x3   :  { %106 = vmatprep.subr.bf16.mxu0 %v177_v0  ;;  %v34_v5 = vld [vmem:[%s236_s2] sm:$0xff]  ;;  %v153_v7 = vcombine.high %v15_v4, %v15_v4  ;;  %v172_v10 = vld [vmem:[%s234_s1 + $0x30] sm:$0xff]   ;;  %v173_v11 = vld [vmem:[%s234_s1 + $0x38] sm:$0xff]   ;;  %v152_v13 = vcombine.low %v15_v4, %v15_v4 }
   0x4   :  { %37 = vperm.xlu0 %165, %v34_v5   ;;  %v170_v8 = vld [vmem:[%s234_s1 + $0x20] sm:$0xff]  }
   0x5   :  { %163 = vmatprep.mubr.msk.bf16.mxu0 %vm100_vm0, %v153_v7  ;;  %v174_v12 = vld [vmem:[%s234_s1 + $0x40] sm:$0xff]  }
   0x6   :  { %107 = vmatpush1.bf16.msra.mxu0 %v167_v2 }
   0x7   :  { %108 = vmatprep.subr.bf16.mxu0 %v177_v0 }
   0xa   :  { %109 = vmatpush1.bf16.msra.mxu0 %v168_v3 }
   0xb   :  { %110 = vmatprep.subr.bf16.mxu0 %v177_v0 }
   0xe   :  { %111 = vmatpush1.bf16.msra.mxu0 %v169_v6 }
   0xf   :  { %112 = vmatprep.subr.bf16.mxu0 %v177_v0 }
  0x12   :  { %113 = vmatpush1.bf16.msra.mxu0 %v170_v8 }
  0x13   :  { %114 = vmatprep.subr.bf16.mxu0 %v177_v0 }
  0x16   :  { %115 = vmatpush1.bf16.msra.mxu0 %v171_v9 }
  0x17   :  { %116 = vmatprep.subr.bf16.mxu0 %v177_v0 }
  0x1a   :  { %117 = vmatpush1.bf16.msra.mxu0 %v172_v10 }
  0x1b   :  { %118 = vmatprep.subr.bf16.mxu0 %v177_v0 }
  0x1e   :  { %119 = vmatpush1.bf16.msra.mxu0 %v173_v11 }
  0x1f   :  { %120 = vmatprep.subr.bf16.mxu0 %v177_v0 }
  0x22   :  { %121 = vmatpush1.bf16.msra.mxu0 %v174_v12 }
  0x25   :  { %137 = vmatmul.mubr.bf16.vlgmr.msra.gmra.mrb[0].mxu0 %v152_v13 }
  0x83   :  { %v38_v14 = vpop.permute.xlu0 %37 }
  0xf8   :  { %v138_v15 = vpop.f32.mrb[0].mxu0 }
  0xf9   :  { %v139_v16 = vadd.f32 %v138_v15, %v38_v14  ;;  %v140_v17 = vpop.f32.mrb[1].mxu0 }
  0xfa   :  { %v141_v18 = vpop.f32.mrb[2].mxu0 }
  0xfb   :  { %v144_v19 = vmax.f32 %v139_v16, 0.0  ;;  %v142_v20 = vpop.f32.mrb[3].mxu0 }
  0xfd   :  { %v145_v21 = vpack.c.bf16 %v144_v19, %v144_v19 }
  0xff   :  { %147 = vst.msk [vmem:[%s237_s3] sm:$0xf] %vm146_vm1, %v145_v21 }

// kernel: forward.7
= control target key start
LH: loop header
LB: loop body
LE: loop exit
PB: predicated region body
PF: predicated region fallthrough
CT: control target
= control target key end

     0   :  { %v177_v0 = vmov 0.0   ;;  %vm178_vm0 = vmmov 0   ;;  %v179_v2 = vmov 0   ;;  %vm74_vm1 = vcmask 1043456   ;;  %s230_s1 = inlined_call_operand.vmem [shape: bf16[72,50], index: 1, kind: input, shape index: {}]   ;;  %s231_s2 = inlined_call_operand.vmem [shape: f32[16,1], index: 2, kind: input, shape index: {}]   ;;  %s232_s0 = inlined_call_operand.vmem [shape: bf16[16,72], index: 0, kind: input, shape index: {}]   ;;  %s233_s3 = inlined_call_operand.vmem [shape: bf16[16,50], index: 3, kind: output, shape index: {}]  }
   0x1   :  { %153 = vmatprep.subr.bf16.mxu0 %v177_v0  ;;  %v171_v1 = vld [vmem:[%s230_s1] sm:$0xff]   ;;  %163 = vmatprep.mubr.msk.bf16.mxu0 %vm178_vm0, %v177_v0  ;;  %v172_v3 = vld [vmem:[%s230_s1 + $0x8] sm:$0xff]   ;;  %v173_v5 = vld [vmem:[%s230_s1 + $0x10] sm:$0xff]   ;;  %vm70_vm2 = vcmask 588800   ;;  %vm129_vm3 = vcmask 404480  }
   0x2   :  { %170 = vset.pattern.permute.xlu0 %v179_v2  ;;  %154 = vmatpush3.bf16.msra.mxu0 %v171_v1  ;;  %v26_v4 = vld [vmem:[%s231_s2] sm:$0xff]  ;;  %v27_v6 = vld [vmem:[%s231_s2 + $0x8] sm:$0xff]  ;;  %v174_v7 = vld [vmem:[%s230_s1 + $0x18] sm:$0xff]  }
   0x3   :  { %155 = vmatprep.subr.bf16.mxu0 %v177_v0  ;;  %30 = vperm.xlu0 %170, %v26_v4   ;;  %v175_v8 = vld [vmem:[%s230_s1 + $0x20] ss:$0 sps:$4 sm:$0xff]  }
   0x4   :  { %v76_v9 = vsel %vm74_vm1, %v175_v8, 0  ;;  %v176_v10 = vld [vmem:[%s232_s0] sm:$0xff]  }
   0x6   :  { %156 = vmatpush3.bf16.msra.mxu0 %v172_v3 }
   0x7   :  { %157 = vmatprep.subr.bf16.mxu0 %v177_v0  ;;  %35 = vperm.xlu0 %170, %v27_v6  }
   0xa   :  { %158 = vmatpush3.bf16.msra.mxu0 %v173_v5 }
   0xb   :  { %159 = vmatprep.subr.bf16.mxu0 %v177_v0 }
   0xe   :  { %160 = vmatpush3.bf16.msra.mxu0 %v174_v7 }
   0xf   :  { %161 = vmatprep.subr.bf16.mxu0 %v177_v0 }
  0x12   :  { %162 = vmatpush3.bf16.msra.mxu0 %v76_v9 }
  0x15   :  { %164 = vmatmul.mubr.msk.bf16.vlgmr.msra.gmra.mrb[0].mxu0 %vm70_vm2, %v176_v10 }
  0x82   :  { %v31_v11 = vpop.permute.xlu0 %30 }
  0x86   :  { %v36_v15 = vpop.permute.xlu0 %35 }
  0xe8   :  { %v112_v12 = vpop.f32.mrb[0].mxu0 }
  0xe9   :  { %v113_v13 = vadd.f32 %v112_v12, %v31_v11  ;;  %v165_v14 = vpop.f32.mrb[1].mxu0 }
  0xea   :  { %v115_v16 = vpop.f32.mrb[2].mxu0 }
  0xeb   :  { %v119_v17 = vmax.f32 %v113_v13, 0.0  ;;  %v116_v18 = vadd.f32 %v115_v16, %v36_v15  ;;  %v166_v19 = vpop.f32.mrb[3].mxu0 }
  0xed   :  { %v145_v20 = vpack.c.bf16 %v119_v17, %v119_v17  ;;  %v120_v21 = vmax.f32 %v116_v18, 0.0 }
  0xef   :  { %130 = vst.msk [vmem:[%s233_s3] sm:$0xf] %vm129_vm3, %v145_v20  ;;  %v146_v22 = vpack.c.bf16 %v120_v21, %v120_v21 }
  0xf1   :  { %131 = vst.msk [vmem:[%s233_s3 + $0x4] sm:$0xf] %vm129_vm3, %v146_v22 }

// kernel: forward.8
= control target key start
LH: loop header
LB: loop body
LE: loop exit
PB: predicated region body
PF: predicated region fallthrough
CT: control target
= control target key end

     0   :  { %v1111_v1 = vmov 0   ;;  %vm636_vm0 = vcmask 130048   ;;  %vm825_vm1 = vcmask 1043456   ;;  %vm826_vm2 = vcmask 539652   ;;  %s1453_s1 = inlined_call_operand.vmem [shape: bf16[400,450], index: 1, kind: input, shape index: {}]   ;;  %s1454_s0 = inlined_call_operand.vmem [shape: bf16[8,400], index: 0, kind: input, shape index: {}]   ;;  %s1455_s2 = inlined_call_operand.vmem [shape: f32[8,1], index: 2, kind: input, shape index: {}]   ;;  %s1456_s3 = inlined_call_operand.vmem [shape: bf16[8,450], index: 3, kind: output, shape index: {}]  }
   0x1   :  { %v957_v0 = vld [vmem:[%s1453_s1 + $0x4] ss:$16 sps:$4 sm:$0xff]   ;;  %956 = vset.pattern.permute.xlu0 %v1111_v1  ;;  %v959_v2 = vld [vmem:[%s1453_s1 + $0xc] ss:$16 sps:$4 sm:$0xff]   ;;  %v961_v3 = vld [vmem:[%s1453_s1] ss:$16 sps:$4 sm:$0xff]  }
   0x2   :  { %640 = vmatprep.subr.bf16.mxu0 %v957_v0  ;;  %v962_v4 = vld [vmem:[%s1453_s1 + $0x8] ss:$16 sps:$4 sm:$0xff]   ;;  %722 = vmatprep.subr.bf16.mxu1 %v959_v2  ;;  %v963_v5 = vld [vmem:[%s1453_s1 + $0x24] ss:$16 sps:$4 sm:$0xff]   ;;  %v965_v6 = vld [vmem:[%s1453_s1 + $0x2c] ss:$16 sps:$4 sm:$0xff]  }
   0x3   :  { %641 = vmatpush1.bf16.msra.mxu0 %v961_v3  ;;  %723 = vmatpush1.bf16.msra.mxu1 %v962_v4  ;;  %v967_v7 = vld [vmem:[%s1453_s1 + $0x20] ss:$16 sps:$4 sm:$0xff]   ;;  %v968_v8 = vld [vmem:[%s1453_s1 + $0x28] ss:$16 sps:$4 sm:$0xff]   ;;  %v969_v9 = vld [vmem:[%s1453_s1 + $0x44] ss:$16 sps:$4 sm:$0xff]  }
   0x4   :  { %642 = vmatprep.subr.bf16.mxu0 %v963_v5  ;;  %724 = vmatprep.subr.bf16.mxu1 %v965_v6  ;;  %v971_v10 = vld [vmem:[%s1453_s1 + $0x4c] ss:$16 sps:$4 sm:$0xff]   ;;  %v973_v11 = vld [vmem:[%s1453_s1 + $0x40] ss:$16 sps:$4 sm:$0xff]   ;;  %v974_v12 = vld [vmem:[%s1453_s1 + $0x48] ss:$16 sps:$4 sm:$0xff]  }
   0x5   :  { %v975_v13 = vld [vmem:[%s1453_s1 + $0x64] ss:$16 sps:$4 sm:$0xff]   ;;  %v977_v14 = vld [vmem:[%s1453_s1 + $0x6c] ss:$16 sps:$4 sm:$0xff]   ;;  %v979_v15 = vld [vmem:[%s1453_s1 + $0x60] ss:$16 sps:$4 sm:$0xff]  }
   0x6   :  { %v980_v16 = vld [vmem:[%s1453_s1 + $0x68] ss:$16 sps:$4 sm:$0xff]   ;;  %v981_v17 = vld [vmem:[%s1453_s1 + $0x84] ss:$16 sps:$4 sm:$0xff]   ;;  %v983_v18 = vld [vmem:[%s1453_s1 + $0x8c] ss:$16 sps:$4 sm:$0xff]  }
   0x7   :  { %643 = vmatpush1.bf16.msra.mxu0 %v967_v7  ;;  %725 = vmatpush1.bf16.msra.mxu1 %v968_v8  ;;  %v985_v19 = vld [vmem:[%s1453_s1 + $0x80] ss:$16 sps:$4 sm:$0xff]   ;;  %v986_v20 = vld [vmem:[%s1453_s1 + $0x88] ss:$16 sps:$4 sm:$0xff]   ;;  %v987_v21 = vld [vmem:[%s1453_s1 + $0xa4] ss:$16 sps:$4 sm:$0xff]  }
   0x8   :  { %644 = vmatprep.subr.bf16.mxu0 %v969_v9  ;;  %726 = vmatprep.subr.bf16.mxu1 %v971_v10  ;;  %v989_v22 = vld [vmem:[%s1453_s1 + $0xac] ss:$16 sps:$4 sm:$0xff]   ;;  %v991_v23 = vld [vmem:[%s1453_s1 + $0xa0] ss:$16 sps:$4 sm:$0xff]   ;;  %v992_v24 = vld [vmem:[%s1453_s1 + $0xa8] ss:$16 sps:$4 sm:$0xff]  }
   0x9   :  { %v993_v25 = vld [vmem:[%s1453_s1 + $0xc4] ss:$16 sps:$4 sm:$0xff]   ;;  %v995_v26 = vld [vmem:[%s1453_s1 + $0xcc] ss:$16 sps:$4 sm:$0xff]   ;;  %v997_v27 = vld [vmem:[%s1453_s1 + $0xc0] ss:$16 sps:$4 sm:$0xff]  }
   0xa   :  { %v998_v28 = vld [vmem:[%s1453_s1 + $0xc8] ss:$16 sps:$4 sm:$0xff]   ;;  %v999_v29 = vld [vmem:[%s1453_s1 + $0xe4] ss:$16 sps:$4 sm:$0xff]   ;;  %v1001_v30 = vld [vmem:[%s1453_s1 + $0xec] ss:$16 sps:$4 sm:$0xff]  }
   0xb   :  { %645 = vmatpush1.bf16.msra.mxu0 %v973_v11  ;;  %727 = vmatpush1.bf16.msra.mxu1 %v974_v12  ;;  %v1003_v31 = vld [vmem:[%s1453_s1 + $0xe0] ss:$16 sps:$4 sm:$0xff]   ;;  %v1004_v32 = vld [vmem:[%s1453_s1 + $0xe8] ss:$16 sps:$4 sm:$0xff]   ;;  %v1005_v33 = vld [vmem:[%s1453_s1 + $0x104] ss:$16 sps:$4 sm:$0xff]  }
   0xc   :  { %646 = vmatprep.subr.bf16.mxu0 %v975_v13  ;;  %728 = vmatprep.subr.bf16.mxu1 %v977_v14  ;;  %v1007_v34 = vld [vmem:[%s1453_s1 + $0x10c] ss:$16 sps:$4 sm:$0xff]   ;;  %v1009_v35 = vld [vmem:[%s1453_s1 + $0x100] ss:$16 sps:$4 sm:$0xff]   ;;  %v1010_v36 = vld [vmem:[%s1453_s1 + $0x108] ss:$16 sps:$4 sm:$0xff]  }
   0xd   :  { %v1011_v37 = vld [vmem:[%s1453_s1 + $0x124] ss:$16 sps:$4 sm:$0xff]   ;;  %v1013_v38 = vld [vmem:[%s1453_s1 + $0x12c] ss:$16 sps:$4 sm:$0xff]   ;;  %v1015_v39 = vld [vmem:[%s1453_s1 + $0x120] ss:$16 sps:$4 sm:$0xff]  }
   0xe   :  { %v1016_v40 = vld [vmem:[%s1453_s1 + $0x128] ss:$16 sps:$4 sm:$0xff]   ;;  %v1017_v41 = vld [vmem:[%s1453_s1 + $0x144] ss:$16 sps:$4 sm:$0xff]   ;;  %v1019_v42 = vld [vmem:[%s1453_s1 + $0x14c] ss:$16 sps:$4 sm:$0xff]  }
   0xf   :  { %647 = vmatpush1.bf16.msra.mxu0 %v979_v15  ;;  %729 = vmatpush1.bf16.msra.mxu1 %v980_v16  ;;  %v1021_v43 = vld [vmem:[%s1453_s1 + $0x140] ss:$16 sps:$4 sm:$0xff]   ;;  %v1022_v44 = vld [vmem:[%s1453_s1 + $0x148] ss:$16 sps:$4 sm:$0xff]   ;;  %v1023_v45 = vld [vmem:[%s1453_s1 + $0x164] ss:$16 sps:$4 sm:$0xff]  }
  0x10   :  { %648 = vmatprep.subr.bf16.mxu0 %v981_v17  ;;  %730 = vmatprep.subr.bf16.mxu1 %v983_v18  ;;  %v1025_v46 = vld [vmem:[%s1453_s1 + $0x16c] ss:$16 sps:$4 sm:$0xff]   ;;  %v15_v47 = vld [vmem:[%s1454_s0] sm:$0xff]  ;;  %v1028_v50 = vld [vmem:[%s1453_s1 + $0x168] ss:$16 sps:$4 sm:$0xff]  }
  0x11   :  { %v834_v48 = vcombine.high %v15_v47, %v15_v47  ;;  %v1027_v49 = vld [vmem:[%s1453_s1 + $0x160] ss:$16 sps:$4 sm:$0xff]   ;;  %v1029_v51 = vld [vmem:[%s1453_s1 + $0x184] ss:$16 sps:$4 sm:$0xff]   ;;  %v1031_v52 = vld [vmem:[%s1453_s1 + $0x18c] ss:$16 sps:$4 sm:$0xff]   ;;  %v833_v6 = vcombine.low %v15_v47, %v15_v47 }
  0x12   :  { %v1033_v53 = vld [vmem:[%s1453_s1 + $0x180] ss:$16 sps:$4 sm:$0xff]   ;;  %v1034_v54 = vld [vmem:[%s1453_s1 + $0x188] ss:$16 sps:$4 sm:$0xff]   ;;  %v1035_v55 = vld [vmem:[%s1453_s1 + $0x1a4] ss:$16 sps:$4 sm:$0xff]  }
  0x13   :  { %649 = vmatpush1.bf16.msra.mxu0 %v985_v19  ;;  %731 = vmatpush1.bf16.msra.mxu1 %v986_v20  ;;  %v1037_v56 = vld [vmem:[%s1453_s1 + $0x1ac] ss:$16 sps:$4 sm:$0xff]   ;;  %v1039_v57 = vld [vmem:[%s1453_s1 + $0x1a0] ss:$16 sps:$4 sm:$0xff]   ;;  %v1040_v58 = vld [vmem:[%s1453_s1 + $0x1a8] ss:$16 sps:$4 sm:$0xff]  }
  0x14   :  { %650 = vmatprep.subr.bf16.mxu0 %v987_v21  ;;  %732 = vmatprep.subr.bf16.mxu1 %v989_v22  ;;  %v1041_v59 = vld [vmem:[%s1453_s1 + $0x1c4] ss:$16 sps:$4 sm:$0xff]   ;;  %v1043_v60 = vld [vmem:[%s1453_s1 + $0x1cc] ss:$16 sps:$4 sm:$0xff]   ;;  %v1045_v61 = vld [vmem:[%s1453_s1 + $0x1c0] ss:$16 sps:$4 sm:$0xff]  }
  0x15   :  { %672 = vmatprep.mubr.bf16.mxu0 %v834_v48  ;;  %754 = vmatprep.mubr.bf16.mxu1 %v834_v48  ;;  %v1046_v62 = vld [vmem:[%s1453_s1 + $0x1c8] ss:$16 sps:$4 sm:$0xff]   ;;  %v1047_v63 = vld [vmem:[%s1453_s1 + $0x1e4] ss:$16 sps:$4 sm:$0xff]   ;;  %v1049_v0 = vld [vmem:[%s1453_s1 + $0x1ec] ss:$16 sps:$4 sm:$0xff]  }
  0x16   :  { %v1051_v1 = vld [vmem:[%s1453_s1 + $0x1e0] ss:$16 sps:$4 sm:$0xff]   ;;  %v1052_v2 = vld [vmem:[%s1453_s1 + $0x1e8] ss:$16 sps:$4 sm:$0xff]   ;;  %v1059_v3 = vld [vmem:[%s1453_s1 + $0x204] ss:$16 sps:$4 sm:$0xff]  }
  0x17   :  { %651 = vmatpush1.bf16.msra.mxu0 %v991_v23  ;;  %733 = vmatpush1.bf16.msra.mxu1 %v992_v24  ;;  %v1062_v4 = vld [vmem:[%s1453_s1 + $0x20c] ss:$16 sps:$4 sm:$0xff]   ;;  %v1057_v7 = vld [vmem:[%s1453_s1 + $0x200] ss:$16 sps:$4 sm:$0xff]   ;;  %v1060_v8 = vld [vmem:[%s1453_s1 + $0x208] ss:$16 sps:$4 sm:$0xff]  }
  0x18   :  { %652 = vmatprep.subr.bf16.mxu0 %v993_v25  ;;  %734 = vmatprep.subr.bf16.mxu1 %v995_v26  ;;  %v1336_v5 = vld [vmem:[%s1454_s0 + $0x8] sm:$0xff]  ;;  %v1065_v9 = vld [vmem:[%s1453_s1 + $0x224] ss:$16 sps:$4 sm:$0xff]   ;;  %v1063_v12 = vld [vmem:[%s1453_s1 + $0x220] ss:$16 sps:$4 sm:$0xff]  }
  0x19   :  { %v1068_v10 = vld [vmem:[%s1453_s1 + $0x22c] ss:$16 sps:$4 sm:$0xff]   ;;  %v836_v11 = vcombine.high %v1336_v5, %v1336_v5  ;;  %v1066_v13 = vld [vmem:[%s1453_s1 + $0x228] ss:$16 sps:$4 sm:$0xff]   ;;  %v117_v14 = vld [vmem:[%s1455_s2] sm:$0xff] }
  0x1a   :  { %v1071_v15 = vld [vmem:[%s1453_s1 + $0x244] ss:$16 sps:$4 sm:$0xff]   ;;  %v1074_v16 = vld [vmem:[%s1453_s1 + $0x24c] ss:$16 sps:$4 sm:$0xff]   ;;  %120 = vperm.xlu0 %956, %v117_v14   ;;  %v1069_v17 = vld [vmem:[%s1453_s1 + $0x240] ss:$16 sps:$4 sm:$0xff]  }
  0x1b   :  { %653 = vmatpush1.bf16.msra.mxu0 %v997_v27  ;;  %735 = vmatpush1.bf16.msra.mxu1 %v998_v28  ;;  %v1072_v18 = vld [vmem:[%s1453_s1 + $0x248] ss:$16 sps:$4 sm:$0xff]   ;;  %v1077_v19 = vld [vmem:[%s1453_s1 + $0x264] ss:$16 sps:$4 sm:$0xff]   ;;  %v1080_v20 = vld [vmem:[%s1453_s1 + $0x26c] ss:$16 sps:$4 sm:$0xff]  }
  0x1c   :  { %654 = vmatprep.subr.bf16.mxu0 %v999_v29  ;;  %736 = vmatprep.subr.bf16.mxu1 %v1001_v30  ;;  %v1075_v21 = vld [vmem:[%s1453_s1 + $0x260] ss:$16 sps:$4 sm:$0xff]   ;;  %v1078_v22 = vld [vmem:[%s1453_s1 + $0x268] ss:$16 sps:$4 sm:$0xff]   ;;  %v1083_v23 = vld [vmem:[%s1453_s1 + $0x284] ss:$16 sps:$4 sm:$0xff]  }
  0x1d   :  { %v1086_v24 = vld [vmem:[%s1453_s1 + $0x28c] ss:$16 sps:$4 sm:$0xff]   ;;  %v1081_v25 = vld [vmem:[%s1453_s1 + $0x280] ss:$16 sps:$4 sm:$0xff]   ;;  %v1084_v26 = vld [vmem:[%s1453_s1 + $0x288] ss:$16 sps:$4 sm:$0xff]  }
  0x1e   :  { %v1089_v27 = vld [vmem:[%s1453_s1 + $0x2a4] ss:$16 sps:$4 sm:$0xff]   ;;  %v1092_v28 = vld [vmem:[%s1453_s1 + $0x2ac] ss:$16 sps:$4 sm:$0xff]   ;;  %v1087_v29 = vld [vmem:[%s1453_s1 + $0x2a0] ss:$16 sps:$4 sm:$0xff]  }
  0x1f   :  { %655 = vmatpush1.bf16.msra.mxu0 %v1003_v31  ;;  %737 = vmatpush1.bf16.msra.mxu1 %v1004_v32  ;;  %v1090_v30 = vld [vmem:[%s1453_s1 + $0x2a8] ss:$16 sps:$4 sm:$0xff]   ;;  %v1095_v31 = vld [vmem:[%s1453_s1 + $0x2c4] ss:$16 sps:$4 sm:$0xff]   ;;  %v1098_v32 = vld [vmem:[%s1453_s1 + $0x2cc] ss:$16 sps:$4 sm:$0xff]  }
  0x20   :  { %656 = vmatprep.subr.bf16.mxu0 %v1005_v33  ;;  %738 = vmatprep.subr.bf16.mxu1 %v1007_v34  ;;  %v1093_v33 = vld [vmem:[%s1453_s1 + $0x2c0] ss:$16 sps:$4 sm:$0xff]   ;;  %v1096_v34 = vld [vmem:[%s1453_s1 + $0x2c8] ss:$16 sps:$4 sm:$0xff]   ;;  %vm827_vm3 = vmor %vm826_vm2, %vm825_vm1 }
  0x23   :  { %657 = vmatpush1.bf16.msra.mxu0 %v1009_v35  ;;  %739 = vmatpush1.bf16.msra.mxu1 %v1010_v36  ;;  %v1101_v35 = vld [vmem:[%s1453_s1 + $0x2e4] ss:$16 sps:$4 sm:$0xff]   ;;  %v1104_v36 = vld [vmem:[%s1453_s1 + $0x2ec] ss:$16 sps:$4 sm:$0xff]  }
  0x24   :  { %658 = vmatprep.subr.bf16.mxu0 %v1011_v37  ;;  %740 = vmatprep.subr.bf16.mxu1 %v1013_v38  ;;  %v1099_v37 = vld [vmem:[%s1453_s1 + $0x2e0] ss:$16 sps:$4 sm:$0xff]   ;;  %v1102_v38 = vld [vmem:[%s1453_s1 + $0x2e8] ss:$16 sps:$4 sm:$0xff]  }
  0x27   :  { %659 = vmatpush1.bf16.msra.mxu0 %v1015_v39  ;;  %741 = vmatpush1.bf16.msra.mxu1 %v1016_v40  ;;  %v1107_v39 = vld [vmem:[%s1453_s1 + $0x304] ss:$16 sps:$4 sm:$0xff]   ;;  %v1110_v40 = vld [vmem:[%s1453_s1 + $0x30c] ss:$16 sps:$4 sm:$0xff]  }
  0x28   :  { %660 = vmatprep.subr.bf16.mxu0 %v1017_v41  ;;  %742 = vmatprep.subr.bf16.mxu1 %v1019_v42  ;;  %v1105_v41 = vld [vmem:[%s1453_s1 + $0x300] ss:$16 sps:$4 sm:$0xff]   ;;  %v1108_v42 = vld [vmem:[%s1453_s1 + $0x308] ss:$16 sps:$4 sm:$0xff]  }
  0x2b   :  { %661 = vmatpush1.bf16.msra.mxu0 %v1021_v43  ;;  %743 = vmatpush1.bf16.msra.mxu1 %v1022_v44  ;;  %v835_v43 = vcombine.low %v1336_v5, %v1336_v5 }
  0x2c   :  { %662 = vmatprep.subr.bf16.mxu0 %v1023_v45  ;;  %744 = vmatprep.subr.bf16.mxu1 %v1025_v46 }
  0x2f   :  { %663 = vmatpush1.bf16.msra.mxu0 %v1027_v49  ;;  %745 = vmatpush1.bf16.msra.mxu1 %v1028_v50 }
  0x30   :  { %664 = vmatprep.subr.bf16.mxu0 %v1029_v51  ;;  %746 = vmatprep.subr.bf16.mxu1 %v1031_v52 }
  0x33   :  { %665 = vmatpush1.bf16.msra.mxu0 %v1033_v53  ;;  %747 = vmatpush1.bf16.msra.mxu1 %v1034_v54 }
  0x34   :  { %666 = vmatprep.subr.bf16.mxu0 %v1035_v55  ;;  %748 = vmatprep.subr.bf16.mxu1 %v1037_v56 }
  0x37   :  { %667 = vmatpush1.bf16.msra.mxu0 %v1039_v57  ;;  %749 = vmatpush1.bf16.msra.mxu1 %v1040_v58 }
  0x38   :  { %668 = vmatprep.subr.bf16.mxu0 %v1041_v59  ;;  %750 = vmatprep.subr.bf16.mxu1 %v1043_v60 }
  0x3b   :  { %669 = vmatpush1.bf16.msra.mxu0 %v1045_v61  ;;  %751 = vmatpush1.bf16.msra.mxu1 %v1046_v62 }
  0x3c   :  { %670 = vmatprep.subr.bf16.mxu0 %v1047_v63  ;;  %752 = vmatprep.subr.bf16.mxu1 %v1049_v0 }
  0x3f   :  { %671 = vmatpush1.bf16.msra.mxu0 %v1051_v1  ;;  %753 = vmatpush1.bf16.msra.mxu1 %v1052_v2 }
  0x40   :  { %681 = vmatprep.subr.bf16.mxu0 %v1059_v3  ;;  %763 = vmatprep.subr.bf16.mxu1 %v1062_v4 }
  0x42   :  { %673 = vmatmul.mubr.bf16.vlgmr.msra.gmra.mrb[0].mxu0 %v833_v6  ;;  %755 = vmatmul.mubr.bf16.vlgmr.msra.gmra.mrb[0].mxu1 %v833_v6 }
  0x43   :  { %682 = vmatpush1.bf16.msra.mxu0 %v1057_v7  ;;  %764 = vmatpush1.bf16.msra.mxu1 %v1060_v8 }
  0x44   :  { %683 = vmatprep.subr.bf16.mxu0 %v1065_v9  ;;  %765 = vmatprep.subr.bf16.mxu1 %v1068_v10 }
  0x45   :  { %937 = vmatprep.mubr.msk.bf16.mxu0 %vm636_vm0, %v836_v11  ;;  %938 = vmatprep.mubr.msk.bf16.mxu1 %vm636_vm0, %v836_v11 }
  0x47   :  { %684 = vmatpush1.bf16.msra.mxu0 %v1063_v12  ;;  %766 = vmatpush1.bf16.msra.mxu1 %v1066_v13 }
  0x48   :  { %685 = vmatprep.subr.bf16.mxu0 %v1071_v15  ;;  %767 = vmatprep.subr.bf16.mxu1 %v1074_v16 }
  0x4b   :  { %686 = vmatpush1.bf16.msra.mxu0 %v1069_v17  ;;  %768 = vmatpush1.bf16.msra.mxu1 %v1072_v18 }
  0x4c   :  { %687 = vmatprep.subr.bf16.mxu0 %v1077_v19  ;;  %769 = vmatprep.subr.bf16.mxu1 %v1080_v20 }
  0x4f   :  { %688 = vmatpush1.bf16.msra.mxu0 %v1075_v21  ;;  %770 = vmatpush1.bf16.msra.mxu1 %v1078_v22 }
  0x50   :  { %689 = vmatprep.subr.bf16.mxu0 %v1083_v23  ;;  %771 = vmatprep.subr.bf16.mxu1 %v1086_v24 }
  0x53   :  { %690 = vmatpush1.bf16.msra.mxu0 %v1081_v25  ;;  %772 = vmatpush1.bf16.msra.mxu1 %v1084_v26 }
  0x54   :  { %691 = vmatprep.subr.bf16.mxu0 %v1089_v27  ;;  %773 = vmatprep.subr.bf16.mxu1 %v1092_v28 }
  0x57   :  { %692 = vmatpush1.bf16.msra.mxu0 %v1087_v29  ;;  %774 = vmatpush1.bf16.msra.mxu1 %v1090_v30 }
  0x58   :  { %693 = vmatprep.subr.bf16.mxu0 %v1095_v31  ;;  %775 = vmatprep.subr.bf16.mxu1 %v1098_v32 }
  0x5b   :  { %694 = vmatpush1.bf16.msra.mxu0 %v1093_v33  ;;  %776 = vmatpush1.bf16.msra.mxu1 %v1096_v34 }
  0x5c   :  { %695 = vmatprep.subr.bf16.mxu0 %v1101_v35  ;;  %777 = vmatprep.subr.bf16.mxu1 %v1104_v36 }
  0x5f   :  { %696 = vmatpush1.bf16.msra.mxu0 %v1099_v37  ;;  %778 = vmatpush1.bf16.msra.mxu1 %v1102_v38 }
  0x60   :  { %697 = vmatprep.subr.bf16.mxu0 %v1107_v39  ;;  %779 = vmatprep.subr.bf16.mxu1 %v1110_v40 }
  0x63   :  { %698 = vmatpush1.bf16.msra.mxu0 %v1105_v41  ;;  %780 = vmatpush1.bf16.msra.mxu1 %v1108_v42 }
  0x66   :  { %714 = vmatmul.mubr.bf16.vlgmr.msra.gmra.mrb[0].mxu0 %v835_v43  ;;  %796 = vmatmul.mubr.bf16.vlgmr.msra.gmra.mrb[0].mxu1 %v835_v43 }
  0x99   :  { %v121_v44 = vpop.permute.xlu0 %120 }
 0x139   :  { %v715_v45 = vpop.f32.mrb[0].mxu0  ;;  %v797_v46 = vpop.f32.mrb[0].mxu1 }
 0x13a   :  { %v943_v47 = vadd.f32 %v715_v45, %v121_v44  ;;  %v945_v48 = vadd.f32 %v797_v46, %v121_v44  ;;  %v717_v49 = vpop.f32.mrb[1].mxu0  ;;  %v799_v50 = vpop.f32.mrb[1].mxu1 }
 0x13b   :  { %v944_v51 = vadd.f32 %v717_v49, %v121_v44  ;;  %v946_v52 = vadd.f32 %v799_v50, %v121_v44  ;;  %v719_v53 = vpop.f32.mrb[2].mxu0  ;;  %v801_v54 = vpop.f32.mrb[2].mxu1 }
 0x13c   :  { %v804_v55 = vmax.f32 %v943_v47, 0.0  ;;  %v806_v56 = vmax.f32 %v945_v48, 0.0  ;;  %v720_v57 = vpop.f32.mrb[3].mxu0  ;;  %v802_v58 = vpop.f32.mrb[3].mxu1 }
 0x13d   :  { %v805_v59 = vmax.f32 %v944_v51, 0.0  ;;  %v807_v60 = vmax.f32 %v946_v52, 0.0 }
 0x13f   :  { %v941_v61 = vpack.c.bf16 %v805_v59, %v804_v55  ;;  %v942_v62 = vpack.c.bf16 %v807_v60, %v806_v56 }
 0x141   :  { %824 = vst [vmem:[%s1456_s3] sm:$0xff] %v941_v61  ;;  %828 = vst.msk [vmem:[%s1456_s3 + $0x8] sm:$0xff] %vm827_vm3, %v942_v62 }

// kernel: forward.9
= control target key start
LH: loop header
LB: loop body
LE: loop exit
PB: predicated region body
PF: predicated region fallthrough
CT: control target
= control target key end

     0   :  { %v717_v1 = vmov 0   ;;  %vm188_vm0 = vcmask 261120   ;;  %v718_v29 = vmov 0.0   ;;  %vm719_vm1 = vmmov 0   ;;  %s855_s1 = inlined_call_operand.vmem [shape: bf16[32,1568], index: 1, kind: input, shape index: {}]   ;;  %s856_s2 = inlined_call_operand.<no memory space> [shape: f32[1,1], index: 2, kind: input, shape index: {}]   ;;  %s857_s0 = inlined_call_operand.vmem [shape: bf16[1,32], index: 0, kind: input, shape index: {}]   ;;  %s858_s3 = inlined_call_operand.vmem [shape: f32[1,1568], index: 3, kind: output, shape index: {}]  }
   0x1   :  { %v653_v0 = vld [vmem:[%s855_s1 + $0x4] ss:$52 sps:$4 sm:$0xff]   ;;  %224 = vmatprep.mubr.bf16.mxu0 %v717_v1  ;;  %265 = vmatprep.mubr.bf16.mxu1 %v717_v1  ;;  %v8_v2 = vstv %s856_s2  ;;  %v655_v3 = vld [vmem:[%s855_s1 + $0xc] ss:$52 sps:$4 sm:$0xff]   ;;  %v658_v5 = vld [vmem:[%s855_s1 + $0x8] ss:$52 sps:$4 sm:$0xff]   ;;  %v52_v31 = vlaneseq }
   0x2   :  { %652 = vset.pattern.permute.xlu0 %v717_v1  ;;  %9 = vst [vmem:[#allocation2] sm:$0x1] %v8_v2  ;;  %192 = vmatprep.subr.bf16.mxu0 %v653_v0  ;;  %v657_v4 = vld [vmem:[%s855_s1] ss:$52 sps:$4 sm:$0xff]   ;;  %v663_v8 = vld [vmem:[%s855_s1 + $0x68] ss:$52 sps:$4 sm:$0xff]  }
   0x3   :  { %233 = vmatprep.subr.bf16.mxu1 %v655_v3  ;;  %v659_v6 = vld [vmem:[%s855_s1 + $0x6c] ss:$52 sps:$4 sm:$0xff]   ;;  %193 = vmatpush1.bf16.msra.mxu0 %v657_v4  ;;  %v661_v7 = vld [vmem:[%s855_s1 + $0x74] ss:$52 sps:$4 sm:$0xff]   ;;  %v664_v9 = vld [vmem:[%s855_s1 + $0x70] ss:$52 sps:$4 sm:$0xff]  }
   0x4   :  { %234 = vmatpush1.bf16.msra.mxu1 %v658_v5  ;;  %194 = vmatprep.subr.bf16.mxu0 %v659_v6  ;;  %v17_v10 = vld [vmem:[%s857_s0] sm:$0x1]  ;;  %v665_v11 = vld [vmem:[%s855_s1 + $0x10] ss:$52 sps:$4 sm:$0xff]   ;;  %v667_v12 = vld [vmem:[%s855_s1 + $0x14] ss:$52 sps:$4 sm:$0xff]  }
   0x5   :  { %235 = vmatprep.subr.bf16.mxu1 %v661_v7  ;;  %v668_v13 = vld [vmem:[%s855_s1 + $0x18] ss:$52 sps:$4 sm:$0xff]   ;;  %v670_v14 = vld [vmem:[%s855_s1 + $0x1c] ss:$52 sps:$4 sm:$0xff]   ;;  %v674_v18 = vld [vmem:[%s855_s1 + $0x80] ss:$52 sps:$4 sm:$0xff]  }
   0x6   :  { %v673_v15 = vld [vmem:[%s855_s1 + $0x7c] ss:$52 sps:$4 sm:$0xff]   ;;  %v676_v16 = vld [vmem:[%s855_s1 + $0x84] ss:$52 sps:$4 sm:$0xff]   ;;  %v682_v20 = vld [vmem:[%s855_s1 + $0x2c] ss:$52 sps:$4 sm:$0xff]  }
   0x7   :  { %195 = vmatpush1.bf16.msra.mxu0 %v663_v8  ;;  %v671_v17 = vld [vmem:[%s855_s1 + $0x78] ss:$52 sps:$4 sm:$0xff]   ;;  %v677_v21 = vld [vmem:[%s855_s1 + $0x20] ss:$52 sps:$4 sm:$0xff]   ;;  %v680_v22 = vld [vmem:[%s855_s1 + $0x28] ss:$52 sps:$4 sm:$0xff]  }
   0x8   :  { %236 = vmatpush1.bf16.msra.mxu1 %v664_v9  ;;  %274 = vmatprep.subr.bf16.mxu0 %v667_v12  ;;  %v679_v19 = vld [vmem:[%s855_s1 + $0x24] ss:$52 sps:$4 sm:$0xff]   ;;  %v685_v23 = vld [vmem:[%s855_s1 + $0x8c] ss:$52 sps:$4 sm:$0xff]   ;;  %v688_v24 = vld [vmem:[%s855_s1 + $0x94] ss:$52 sps:$4 sm:$0xff]  }
   0x9   :  { %315 = vmatprep.subr.bf16.mxu1 %v670_v14  ;;  %v683_v25 = vld [vmem:[%s855_s1 + $0x88] ss:$52 sps:$4 sm:$0xff]   ;;  %v686_v26 = vld [vmem:[%s855_s1 + $0x90] ss:$52 sps:$4 sm:$0xff]   ;;  %v46_v27 = vld [vmem:[#allocation2] sm:$0x1] }
   0xa   :  { %630 = vmatmul.mubr.msk.bf16.vlgmr.msra.gmra.mrb[0].mxu0 %vm188_vm0, %v17_v10  ;;  %49 = vperm.xlu0 %652, %v46_v27   ;;  %v689_v28 = vld [vmem:[%s855_s1 + $0x30] ss:$52 sps:$4 sm:$0xff]   ;;  %v690_v30 = vld [vmem:[%s855_s1 + $0x98] ss:$52 sps:$4 sm:$0xff]   ;;  %v53_v32 = vshrl.u32 %v52_v31, 7  ;;  %vm597_vm2 = vcmp.lt.s32.totalorder %v52_v31, 544 }
   0xb   :  { %631 = vmatmul.mubr.msk.bf16.vlgmr.msra.gmra.mrb[0].mxu1 %vm188_vm0, %v17_v10  ;;  %275 = vmatpush1.bf16.msra.mxu0 %v665_v11  ;;  %v720_v48 = vmov 1966171168  }
   0xc   :  { %316 = vmatpush1.bf16.msra.mxu1 %v668_v13  ;;  %276 = vmatprep.subr.bf16.mxu0 %v673_v15  ;;  %v54_v33 = vsub.s32 0, %v53_v32  ;;  %v509_v49 = vunpack.c.l.s4 %v720_v48 }
   0xd   :  { %317 = vmatprep.subr.bf16.mxu1 %v676_v16  ;;  %306 = vmatprep.mubr.bf16.mxu0 %v717_v1 }
   0xe   :  { %347 = vmatprep.mubr.bf16.mxu1 %v717_v1  ;;  %v510_v56 = vunpack.c.0.s8 %v509_v49 }
   0xf   :  { %277 = vmatpush1.bf16.msra.mxu0 %v671_v17 }
  0x10   :  { %318 = vmatpush1.bf16.msra.mxu1 %v674_v18  ;;  %356 = vmatprep.subr.bf16.mxu0 %v679_v19 }
  0x11   :  { %397 = vmatprep.subr.bf16.mxu1 %v682_v20 }
  0x12   :  { %632 = vmatmul.mubr.msk.bf16.vlgmr.msra.gmra.mrb[4].mxu0 %vm188_vm0, %v17_v10 }
  0x13   :  { %633 = vmatmul.mubr.msk.bf16.vlgmr.msra.gmra.mrb[4].mxu1 %vm188_vm0, %v17_v10  ;;  %357 = vmatpush1.bf16.msra.mxu0 %v677_v21 }
  0x14   :  { %398 = vmatpush1.bf16.msra.mxu1 %v680_v22  ;;  %358 = vmatprep.subr.bf16.mxu0 %v685_v23 }
  0x15   :  { %399 = vmatprep.subr.bf16.mxu1 %v688_v24  ;;  %388 = vmatprep.mubr.bf16.mxu0 %v717_v1 }
  0x16   :  { %429 = vmatprep.mubr.bf16.mxu1 %v717_v1  ;;  %v513_v1 = vsub.s32 %v510_v56, %v53_v32 }
  0x17   :  { %359 = vmatpush1.bf16.msra.mxu0 %v683_v25 }
  0x18   :  { %400 = vmatpush1.bf16.msra.mxu1 %v686_v26  ;;  %640 = vmatprep.subr.bf16.mxu0 %v718_v29 }
  0x1a   :  { %634 = vmatmul.mubr.msk.bf16.vlgmr.msra.gmra.mrb[8].mxu0 %vm188_vm0, %v17_v10 }
  0x1b   :  { %635 = vmatmul.mubr.msk.bf16.vlgmr.msra.gmra.mrb[8].mxu1 %vm188_vm0, %v17_v10  ;;  %641 = vmatpush3.bf16.msra.mxu0 %v689_v28 }
  0x1c   :  { %644 = vmatprep.mubr.msk.bf16.mxu0 %vm719_vm1, %v718_v29  ;;  %642 = vmatprep.subr.bf16.mxu0 %v718_v29 }
  0x1f   :  { %643 = vmatpush3.bf16.msra.mxu0 %v690_v30 }
  0x22   :  { %645 = vmatmul.mubr.msk.bf16.vlgmr.msra.gmra.mrb[12].mxu0 %vm188_vm0, %v17_v10 }
  0x89   :  { %v50_v34 = vpop.permute.xlu0 %49 }
  0x8a   :  { %v833_v35 = vrot.slane %v50_v34, %v54_v33 }
  0xdd   :  { %v226_v36 = vpop.f32.mrb[0].mxu0 }
  0xde   :  { %v267_v37 = vpop.f32.mrb[0].mxu1  ;;  %v227_v38 = vadd.f32 %v226_v36, %v833_v35  ;;  %v228_v40 = vpop.f32.mrb[1].mxu0 }
  0xdf   :  { %v268_v39 = vadd.f32 %v267_v37, %v833_v35  ;;  %v269_v41 = vpop.f32.mrb[1].mxu1  ;;  %v229_v42 = vadd.f32 %v228_v40, %v833_v35  ;;  %v230_v44 = vpop.f32.mrb[2].mxu0 }
  0xe0   :  { %v270_v43 = vadd.f32 %v269_v41, %v833_v35  ;;  %v271_v45 = vpop.f32.mrb[2].mxu1  ;;  %691 = vtanh.f32 %v227_v38  ;;  %v231_v46 = vpop.f32.mrb[3].mxu0 }
  0xe1   :  { %v272_v47 = vpop.f32.mrb[3].mxu1  ;;  %693 = vtanh.f32 %v268_v39 }
  0xe2   :  { %695 = vtanh.f32 %v229_v42 }
  0xe3   :  { %697 = vtanh.f32 %v270_v43 }
  0xe5   :  { %v308_v50 = vpop.f32.mrb[4].mxu0 }
  0xe6   :  { %v349_v51 = vpop.f32.mrb[4].mxu1  ;;  %v309_v52 = vadd.f32 %v308_v50, %v833_v35  ;;  %v310_v54 = vpop.f32.mrb[5].mxu0 }
  0xe7   :  { %v350_v53 = vadd.f32 %v349_v51, %v833_v35  ;;  %v351_v55 = vpop.f32.mrb[5].mxu1  ;;  %v311_v57 = vadd.f32 %v310_v54, %v833_v35  ;;  %v312_v59 = vpop.f32.mrb[6].mxu0 }
  0xe8   :  { %v352_v58 = vadd.f32 %v351_v55, %v833_v35  ;;  %v353_v60 = vpop.f32.mrb[6].mxu1  ;;  %699 = vtanh.f32 %v309_v52  ;;  %v313_v61 = vpop.f32.mrb[7].mxu0 }
  0xe9   :  { %v354_v62 = vpop.f32.mrb[7].mxu1  ;;  %701 = vtanh.f32 %v350_v53 }
  0xea   :  { %v692_v63 = vpop.eup %691  ;;  %703 = vtanh.f32 %v311_v57 }
  0xeb   :  { %v694_v0 = vpop.eup %693  ;;  %705 = vtanh.f32 %v352_v58 }
  0xec   :  { %v696_v2 = vpop.eup %695 }
  0xed   :  { %v698_v3 = vpop.eup %697  ;;  %v504_v4 = vcombine.low %v692_v63, %v696_v2  ;;  %v390_v5 = vpop.f32.mrb[8].mxu0 }
  0xee   :  { %v431_v6 = vpop.f32.mrb[8].mxu1  ;;  %v505_v7 = vcombine.low %v694_v0, %v698_v3  ;;  %v391_v8 = vadd.f32 %v390_v5, %v833_v35  ;;  %v392_v10 = vpop.f32.mrb[9].mxu0 }
  0xef   :  { %v432_v9 = vadd.f32 %v431_v6, %v833_v35  ;;  %v433_v11 = vpop.f32.mrb[9].mxu1  ;;  %v514_v12 = vrot.slane %v504_v4, %v513_v1  ;;  %v393_v13 = vadd.f32 %v392_v10, %v833_v35  ;;  %v394_v15 = vpop.f32.mrb[10].mxu0 }
  0xf0   :  { %v434_v14 = vadd.f32 %v433_v11, %v833_v35  ;;  %v435_v16 = vpop.f32.mrb[10].mxu1  ;;  %v521_v17 = vrot.slane %v505_v7, %v513_v1  ;;  %707 = vtanh.f32 %v391_v8  ;;  %v395_v18 = vpop.f32.mrb[11].mxu0 }
  0xf1   :  { %v436_v19 = vpop.f32.mrb[11].mxu1  ;;  %709 = vtanh.f32 %v432_v9 }
  0xf2   :  { %v700_v20 = vpop.eup %699  ;;  %v536_v21 = vcombine.low %v514_v12, %v521_v17  ;;  %711 = vtanh.f32 %v393_v13 }
  0xf3   :  { %v702_v22 = vpop.eup %701  ;;  %713 = vtanh.f32 %v434_v14 }
  0xf4   :  { %v704_v23 = vpop.eup %703  ;;  %v544_v40 = vrot.slane %v536_v21, %v513_v1 }
  0xf5   :  { %v706_v24 = vpop.eup %705  ;;  %v506_v25 = vcombine.low %v700_v20, %v704_v23  ;;  %v472_v26 = vpop.f32.mrb[12].mxu0 }
  0xf6   :  { %v507_v27 = vcombine.low %v702_v22, %v706_v24  ;;  %v473_v28 = vadd.f32 %v472_v26, %v833_v35  ;;  %v646_v29 = vpop.f32.mrb[13].mxu0 }
  0xf7   :  { %v528_v30 = vrot.slane %v506_v25, %v513_v1  ;;  %v475_v32 = vpop.f32.mrb[14].mxu0 }
  0xf8   :  { %v535_v33 = vrot.slane %v507_v27, %v513_v1  ;;  %715 = vtanh.f32 %v473_v28  ;;  %v647_v34 = vpop.f32.mrb[15].mxu0 }
  0xfa   :  { %v708_v36 = vpop.eup %707  ;;  %v537_v37 = vcombine.low %v528_v30, %v535_v33 }
  0xfb   :  { %v710_v38 = vpop.eup %709 }
  0xfc   :  { %v712_v39 = vpop.eup %711  ;;  %v551_v41 = vrot.slane %v537_v37, %v513_v1 }
  0xfd   :  { %v714_v42 = vpop.eup %713  ;;  %v553_v43 = vcombine.low %v708_v36, %v712_v39 }
  0xfe   :  { %v552_v44 = vcombine.low %v544_v40, %v551_v41  ;;  %v554_v45 = vcombine.low %v710_v38, %v714_v42 }
  0xff   :  { %v561_v46 = vrot.slane %v553_v43, %v513_v1 }
 0x100   :  { %594 = vst [vmem:[%s858_s3] sm:$0xff] %v552_v44  ;;  %v568_v35 = vrot.slane %v554_v45, %v513_v1 }
 0x102   :  { %v716_v47 = vpop.eup %715  ;;  %v576_v48 = vcombine.low %v561_v46, %v568_v35 }
 0x103   :  { %v575_v49 = vrot.slane %v716_v47, %v513_v1 }
 0x104   :  { %v583_v50 = vrot.slane %v576_v48, %v513_v1 }
 0x105   :  { %v590_v51 = vrot.slane %v575_v49, %v513_v1 }
 0x107   :  { %v591_v52 = vcombine.low %v583_v50, %v590_v51 }
 0x109   :  { %599 = vst.msk [vmem:[%s858_s3 + $0x8] sm:$0x1f] %vm597_vm2, %v591_v52 }

</bundles_post_ra>
